<compile_context>
chip_gen: v6e
topology: v6e:2x2x1
jax: 0.10.0
libtpu: 0.0.40
codegen_flags: <defaults>
</compile_context>

<pallas_src>
import functools

import jax
import jax.numpy as jnp
from jax.experimental import pallas as pl
from jax.experimental.pallas import tpu as pltpu

_SUBLANE = 8


def _round_up(x, m):
    return ((x + m - 1) // m) * m


# ----------------------------- Pallas kernel ------------------------------- #

def _fused_linear_kernel(x_ref, w_ref, b_ref, o_ref, *, apply_sigmoid):
    """One row-tile of  y = (sigmoid)(x @ W + b).

    x_ref : (tile_rows, Din)  f32   streamed rows
    w_ref : (Din, Dout)       bf16  resident (constant index_map)
    b_ref : (1, Dout)         f32   resident
    o_ref : (tile_rows, Dout) f32
    """
    # Cast streamed activations to bf16 in-kernel so the MXU runs at its native
    # bf16 rate; weights are already bf16 (cast once at model init).
    x = x_ref[...].astype(jnp.bfloat16)
    acc = jnp.dot(x, w_ref[...], preferred_element_type=jnp.float32)
    acc = acc + b_ref[...]                 # bias strictly on the f32 accumulator
    if apply_sigmoid:
        # f32 epilogue (v5e has no bf16 VPU/EUP).  If the VPU ever becomes the
        # binding slot, swap for:
        #   acc = pl.reciprocal(1.0 + jnp.exp(-acc), approx=True)
        acc = jax.nn.sigmoid(acc)
    o_ref[...] = acc.astype(o_ref.dtype)


# ------------------------------ JAX wrapper -------------------------------- #

def _pick_tile_rows(din, dout, budget_bytes):
    """Largest row tile whose double-buffered x/out tiles fit the VMEM budget."""
    fixed = din * dout * 2 * 2 + dout * 4 * 2        # bf16 weight + f32 bias, 2 bufs each
    per_row = din * 4 * 2 + dout * 4 * 2             # f32 x + out tiles, double-buffered
    tile = max((budget_bytes - fixed) // max(per_row, 1), _SUBLANE)
    tile = min(int(tile), 1024)                      # diminishing returns past ~512-1024
    return max((tile // _SUBLANE) * _SUBLANE, _SUBLANE)


def fused_linear(x, w_bf16, b_row, *, apply_sigmoid=False, force_pallas=False,
                 vmem_budget_bytes=12 << 20):
    """y = (sigmoid)(x @ w + b) with bf16 MXU inputs and an f32 accumulator.

    x      : [N, Din]    f32
    w_bf16 : [Din, Dout] bf16  (pre-transposed, pre-cast once at model init)
    b_row  : [1, Dout]   f32
    returns  [N, Dout]   f32
    """
    N, Din = x.shape
    Din_w, Dout = w_bf16.shape
    assert Din == Din_w, "weight must be [Din, Dout]"
    assert b_row.shape == (1, Dout)

    # Small-size fast path: at toy sizes the pallas_call fixed cost dominates;
    # plain XLA uses the same bf16-input / f32-accumulate math.
    if not force_pallas and N * Din * Dout < (1 << 20):
        y = jnp.dot(x.astype(jnp.bfloat16), w_bf16,
                    preferred_element_type=jnp.float32) + b_row
        return jax.nn.sigmoid(y) if apply_sigmoid else y

    tile_rows = _pick_tile_rows(Din, Dout, vmem_budget_bytes)

    if N <= tile_rows:
        # Single block with full-extent dims (block dims == array dims are
        # always legal): NO row padding and NO post-call slice.
        tile, n_pad, x_p = N, N, x
    else:
        tile = tile_rows
        n_pad = _round_up(N, tile)
        x_p = jnp.pad(x, ((0, n_pad - N), (0, 0))) if n_pad != N else x

    grid = (n_pad // tile,)

    # Scoped-VMEM limit derived from the actual block sizes (+ headroom) so the
    # pipeline never trips v5e's 16 MiB default nor silently shrinks tiles.
    vmem_limit = (
        2 * tile * Din * 4        # x tile, double-buffered, f32
        + 2 * Din * Dout * 2      # weight, bf16 (2 pipeline buffers by default)
        + 2 * Dout * 4            # bias
        + 2 * tile * Dout * 4     # out tile, double-buffered, f32
        + (2 << 20))              # headroom for compiler internals
    vmem_limit = int(min(max(vmem_limit, 16 << 20), 48 << 20))

    out = pl.pallas_call(
        functools.partial(_fused_linear_kernel, apply_sigmoid=apply_sigmoid),
        out_shape=jax.ShapeDtypeStruct((n_pad, Dout), jnp.float32),
        grid=grid,
        in_specs=[
            pl.BlockSpec((tile, Din), lambda i: (i, 0)),   # streamed rows
            # Weight/bias index_maps are constant -> same block every grid step.
            # TODO(synk): pipeline_mode=pl.Buffered(1) would drop their unused
            #             second pipeline buffer; left default for portability.
            pl.BlockSpec((Din, Dout), lambda i: (0, 0)),   # resident weight
            pl.BlockSpec((1, Dout), lambda i: (0, 0)),     # resident bias
        ],
        # Full-extent last dim: no column pad, no column slice.  Masked stores
        # are cheap at small Dout; lane-dense anyway when Dout % 128 == 0.
        out_specs=pl.BlockSpec((tile, Dout), lambda i: (i, 0)),
        compiler_params=pltpu.CompilerParams(
            # Row blocks are independent; note plain "parallel" does not by
            # itself shard across v7x's two TensorCores (that needs
            # CORE_PARALLEL / pl.core_map, left off for single-TC portability).
            dimension_semantics=("parallel",),
            vmem_limit_bytes=vmem_limit,
        ),
    )(x_p, w_bf16, b_row)

    # Only the tiled-with-remainder path pays a row slice.
    return out if n_pad == N else out[:N]


# --------------------------- GraphTransformer ------------------------------ #

class GraphTransformerPallas:
    """JAX/Pallas re-implementation of GraphTransformer.forward.

    Parameters are created deterministically in-script (synthetic weights).
    All parameter prep (transpose, bf16 cast, bias reshape) happens ONCE here.
    """

    def __init__(self, in_channels, decoder_channels, key, *, force_pallas=False):
        channels = [int(n) for n in decoder_channels.split(",")]
        c0 = channels[0]
        k1, k2, k3, k4 = jax.random.split(key, 4)
        scale = 1.0 / jnp.sqrt(jnp.float32(in_channels))
        # nn.Linear weight is [out, in]; store transposed [in, out], cast bf16 once.
        self.w_v = (jax.random.normal(k1, (in_channels, c0), jnp.float32) * scale
                    ).astype(jnp.bfloat16)
        self.b_v = (jax.random.normal(k2, (c0,), jnp.float32) * scale).reshape(1, c0)
        # emb_c parameters kept for fidelity with the reference module, but its
        # launch is skipped: the encoder/decoder bodies that would consume it
        # are unavailable, so it is dead compute.
        self.w_c = (jax.random.normal(k3, (in_channels, c0), jnp.float32) * scale
                    ).astype(jnp.bfloat16)
        self.b_c = (jax.random.normal(k4, (c0,), jnp.float32) * scale).reshape(1, c0)
        self.out_channels = c0
        self.num_layers = len(channels) - 1
        self.force_pallas = force_pallas

    def forward(self, xv, xc, adj_pos=None, adj_neg=None,
                meta_paths_var=None, meta_paths_cls=None):
        # Reference: x = emb_v(xv); c = emb_c(xc); enc/dec layers; sigmoid(x).
        # EncoderLayer/DecoderLayer are not defined in the reference source, so
        # the layer loop is identity and c is dead; the reduced forward is
        # sigmoid(emb_v(xv)) with the sigmoid fused as the kernel epilogue.
        x = fused_linear(xv, self.w_v, self.b_v, apply_sigmoid=True,
                         force_pallas=self.force_pallas)
        # TODO(synk): emb_c + EncoderLayer/DecoderLayer message passing once
        #             their definitions are available; fuse emb_v/emb_c into a
        #             single two-output pallas_call at that point.
        del xc
        for _ in range(self.num_layers):
            pass  # identity pass-through
        return x


# --------------------------------- main ------------------------------------ #

if __name__ == "__main__":
    key = jax.random.PRNGKey(0)
    k_model, k_xv, k_xc = jax.random.split(key, 3)

    in_channels = 8
    decoder_channels = "32,32"
    num_vars = 19      # deliberately NOT a multiple of 8 -> exercises full-extent blocks
    num_clauses = 7    # clause nodes

    # force_pallas=True so the demo exercises the kernel despite the toy size.
    model = GraphTransformerPallas(in_channels, decoder_channels, k_model,
                                   force_pallas=True)

    xv = jax.random.normal(k_xv, (num_vars, in_channels), jnp.float32)
    xc = jax.random.normal(k_xc, (num_clauses, in_channels), jnp.float32)

    out = jax.block_until_ready(model.forward(xv, xc))
    assert out.shape == (num_vars, 32), out.shape

    # Tight check vs an XLA reference following the same bf16-input /
    # f32-accumulate path as the kernel.
    ref_bf16 = jax.nn.sigmoid(
        jnp.dot(xv.astype(jnp.bfloat16), model.w_v,
                preferred_element_type=jnp.float32) + model.b_v)
    assert jnp.allclose(out, ref_bf16, atol=1e-4), "mismatch vs bf16-path reference"

    # Loose sanity check vs the pure-f32 math of the reduced forward pass.
    ref_f32 = jax.nn.sigmoid(xv @ model.w_v.astype(jnp.float32) + model.b_v)
    assert jnp.allclose(out, ref_f32, atol=5e-2), "mismatch vs f32 reference"

    print("KERNEL_OK")
</pallas_src>

<mosaic_0001>
module attributes {stable_mosaic.version = 11 : i64} {
  func.func @_fused_linear_kernel(%arg0: i32, %arg1: memref<19x8xf32, #tpu.memory_space<vmem>>, %arg2: memref<8x32xbf16, #tpu.memory_space<vmem>>, %arg3: memref<1x32xf32, #tpu.memory_space<vmem>>, %arg4: memref<19x32xf32, #tpu.memory_space<vmem>>) attributes {dimension_semantics = [#tpu.dimension_semantics<parallel>], iteration_bounds = array<i64: 1>, scalar_prefetch = 0 : i64, scratch_operands = 0 : i64, tpu.core_type = #tpu.core_type<tc>, window_params = [{transform_indices = @transform_0, window_bounds = array<i64: 19, 8>}, {pipeline_mode = #tpu.pipeline_mode<synchronous>, transform_indices = @transform_1, window_bounds = array<i64: 8, 32>}, {pipeline_mode = #tpu.pipeline_mode<synchronous>, transform_indices = @transform_2, window_bounds = array<i64: 1, 32>}, {transform_indices = @transform_3, window_bounds = array<i64: 19, 32>}]} {
    %c0 = arith.constant 0 : index
    %c0_0 = arith.constant 0 : index
    %0 = vector.load %arg1[%c0, %c0_0] : memref<19x8xf32, #tpu.memory_space<vmem>>, vector<19x8xf32>
    %1 = arith.truncf %0 : vector<19x8xf32> to vector<19x8xbf16>
    %c0_1 = arith.constant 0 : index
    %c0_2 = arith.constant 0 : index
    %2 = vector.load %arg2[%c0_1, %c0_2] : memref<8x32xbf16, #tpu.memory_space<vmem>>, vector<8x32xbf16>
    %cst = arith.constant dense<0.000000e+00> : vector<19x32xf32>
    %3 = tpu.matmul %1, %2, %cst {dimension_numbers = #tpu.dot_dimension_numbers<[1], [0], [0], [1], [0, 0, 1, 1], [], []>} : vector<19x8xbf16>, vector<8x32xbf16>, vector<19x32xf32> -> vector<19x32xf32>
    %c0_3 = arith.constant 0 : index
    %c0_4 = arith.constant 0 : index
    %4 = vector.load %arg3[%c0_3, %c0_4] : memref<1x32xf32, #tpu.memory_space<vmem>>, vector<1x32xf32>
    %5 = vector.broadcast %4 : vector<1x32xf32> to vector<19x32xf32>
    %6 = arith.addf %3, %5 : vector<19x32xf32>
    %7 = arith.negf %6 : vector<19x32xf32>
    %8 = math.exp %7 : vector<19x32xf32>
    %cst_5 = arith.constant 1.000000e+00 : f32
    %9 = vector.broadcast %cst_5 : f32 to vector<19x32xf32>
    %10 = arith.addf %9, %8 : vector<19x32xf32>
    %11 = arith.divf %9, %10 : vector<19x32xf32>
    %c0_6 = arith.constant 0 : index
    %c0_7 = arith.constant 0 : index
    %12 = vector.load %arg4[%c0_6, %c0_7] : memref<19x32xf32, #tpu.memory_space<vmem>>, vector<19x32xf32>
    tpu.vector_store %arg4[%c0_6, %c0_7], %11 {strides = array<i32>} : memref<19x32xf32, #tpu.memory_space<vmem>>, vector<19x32xf32>,
    return
  }
  func.func @transform_0(%arg0: i32) -> (i32, i32) {
    %c0_i32 = arith.constant 0 : i32
    %c0_i32_0 = arith.constant 0 : i32
    return %arg0, %c0_i32 : i32, i32
  }
  func.func @transform_1(%arg0: i32) -> (i32, i32) {
    %c0_i32 = arith.constant 0 : i32
    %c0_i32_0 = arith.constant 0 : i32
    %c0_i32_1 = arith.constant 0 : i32
    return %c0_i32, %c0_i32_0 : i32, i32
  }
  func.func @transform_2(%arg0: i32) -> (i32, i32) {
    %c0_i32 = arith.constant 0 : i32
    %c0_i32_0 = arith.constant 0 : i32
    %c0_i32_1 = arith.constant 0 : i32
    return %c0_i32, %c0_i32_0 : i32, i32
  }
  func.func @transform_3(%arg0: i32) -> (i32, i32) {
    %c0_i32 = arith.constant 0 : i32
    %c0_i32_0 = arith.constant 0 : i32
    return %arg0, %c0_i32 : i32, i32
  }
}

</mosaic_0001>

<bundles_post_ra>
// kernel: tpu_custom_call.1
= control target key start
LH: loop header
LB: loop body
LE: loop exit
PB: predicated region body
PF: predicated region fallthrough
CT: control target
= control target key end

     0   :  { %vm36_vm0 = vcmask 1043456   ;;  %vm29_vm1 = vcmask 64512   ;;  %s221_s0 = inlined_call_operand.vmem [shape: f32[19,8], index: 0, kind: input, shape index: {}]   ;;  %s222_s1 = inlined_call_operand.vmem [shape: bf16[8,32], index: 1, kind: input, shape index: {}]   ;;  %s223_s2 = inlined_call_operand.vmem [shape: f32[1,32], index: 2, kind: input, shape index: {}]   ;;  %s224_s3 = inlined_call_operand.hbm [shape: f32[19,32], index: 3, kind: output, shape index: {}]  }
   0x1   :  { %v21_v0 = vld [vmem:[%s222_s1] sm:$0xf]  ;;  %v17_v2 = vld [vmem:[%s221_s0 + $0x8] sm:$0xff]  ;;  %v18_v5 = vld [vmem:[%s221_s0 + $0x10] sm:$0x7] }
   0x2   :  { %v16_v1 = vld [vmem:[%s221_s0] sm:$0xff]  ;;  %142 = vmatprep.subr.msk.bf16.mxu0 %vm36_vm0, %v21_v0  ;;  %v38_v3 = vsel %vm36_vm0, %v21_v0, 0 }
   0x3   :  { %v19_v4 = vpack.c.bf16 %v17_v2, %v16_v1 }
   0x4   :  { %8 = vsyncpa [#allocation3], 0  ;;  %137 = vmatpush3.bf16.msra.mxu0 %v38_v3  ;;  %v20_v6 = vpack.c.bf16 %v18_v5, %v18_v5  ;;  %v127_v7 = vld [vmem:[%s223_s2] ss:$0 sm:$0xff]  ;;  %vm109_vm2 = vcmask 256000   ;;  %vm106_vm3 = vcmask 261120  }
   0x5   :  { %138 = vmatprep.mubr.msk.bf16.mxu0 %vm29_vm1, %v19_v4  ;;  %s180_s0 = smov [#allocation2]  }
   0x6   :  { %s116_s2 = sshll.u32 %s180_s0, 4  ;;  %s117_s2 = int_to_ptr.vmem [resolvable:$true] %s116_s2 }
   0x7   :  { %139 = vmatmul.mubr.msk.bf16.vlgmr.msra.gmra.mxu0 %vm29_vm1, %v20_v6  ;;  %s158_s21 = scalar_lea.vmem %s117_s2, 384  ;;  %p163_p1 = scmp.lt.s32.totalorder %s117_s2, %s117_s2 }
   0x8   :  { %p159_p0 = scmp.ne.s32.totalorder %s117_s2, %s158_s21  ;;  %p164_p2 = scmp.lt.s32.totalorder %s158_s21, %s158_s21 }
   0xa   :  { %p165_p3 = por %p164_p2, %p163_p1 }
   0xc   :  { %p166_p4 = pnand %p165_p3, %p159_p0 }
  0xc7   :  { %v140_v8 = vpop.f32.mrf.mxu0 }
  0xc8   :  { %v83_v9 = vadd.f32 %v140_v8, %v127_v7 }
  0xc9   :  { %v74_v10 = vpop.f32.mrf.mxu0 }
  0xca   :  { %v132_v11 = vmul.f32 -1.442695, %v83_v9  ;;  %v75_v12 = vadd.f32 %v127_v7, %v74_v10 }
  0xcb   :  { %v141_v13 = vpop.f32.mrf.mxu0 }
  0xcc   :  { %146 = vpow2.f32 %v132_v11  ;;  %v130_v14 = vmul.f32 -1.442695, %v75_v12 }
  0xcd   :  { %v77_v15 = vpop.f32.mrf.mxu0 }
  0xce   :  { %148 = vpow2.f32 %v130_v14  ;;  %v78_v16 = vadd.f32 %v127_v7, %v77_v15 }
  0xd0   :  { %v131_v17 = vmul.f32 -1.442695, %v78_v16 }
  0xd2   :  { %150 = vpow2.f32 %v131_v17 }
  0xd9   :  { %v147_v18 = vpop.eup %146 }
  0xda   :  { %v99_v19 = vadd.f32 1.0, %v147_v18 }
  0xdb   :  { %v149_v20 = vpop.eup %148 }
  0xdc   :  { %152 = vrcp.f32 %v99_v19  ;;  %v97_v21 = vadd.f32 1.0, %v149_v20 }
  0xde   :  { %154 = vrcp.f32 %v97_v21 }
  0xdf   :  { %v151_v22 = vpop.eup %150 }
  0xe0   :  { %v98_v23 = vadd.f32 1.0, %v151_v22 }
  0xe2   :  { %156 = vrcp.f32 %v98_v23 }
  0xe9   :  { %v153_v24 = vpop.eup %152 }
  0xea   :  { %110 = vst.msk [vmem:[#allocation2 + $0x10] sm:$0x7] %vm109_vm2, %v153_v24 }
  0xeb   :  { %v155_v25 = vpop.eup %154 }
  0xec   :  { %107 = vst.msk [vmem:[#allocation2] sm:$0xff] %vm106_vm3, %v155_v25 }
  0xef   :  { %v157_v26 = vpop.eup %156 }
  0xf0   :  { %108 = vst.msk [vmem:[#allocation2 + $0x8] sm:$0xff] %vm106_vm3, %v157_v26 }
  0xf1   :  { %169 = shalt.err (!%p166_p4)
}
  0xf2   :  { %s181_s22 = smov 128   ;;  %s182_s23 = smov 8  }
  0xf3   :  { %122 = dma.vmem_to_hbm [thread:$0]  %s117_s2, 384, %s224_s3, [#allocation3], %s181_s22, %s181_s22, %s182_s23  }
  0xf4   :  { %178 = dma.done.wait [#allocation3], 384  }
  0xf5   :  { %179 = vsyncadd [#allocation3], 4294966912 }
  0xf6   :  { %126 = vsyncpa [#allocation3], 1 }

</bundles_post_ra>
